<compile_context>
chip_gen: v7x
topology: tpu7x:2x2x1
jax: 0.10.0
libtpu: 0.0.40
codegen_flags: <defaults>
</compile_context>

<pallas_src>
import jax
import jax.numpy as jnp
from jax.experimental import pallas as pl
from jax.experimental.pallas import tpu as pltpu

# Property-index dictionary (stand-in for bk.prop_idx_dict); column 1 is the sort key.
PROP_IDX = {"sort_key": 1, "shape_tri": 2, "shape_sq": 3, "shape_cir": 4}
SORT_COL = PROP_IDX["sort_key"]
SHAPE_INDICES = (PROP_IDX["shape_tri"], PROP_IDX["shape_sq"], PROP_IDX["shape_cir"])
SHAPE_LO, SHAPE_HI = SHAPE_INDICES[0], SHAPE_INDICES[-1] + 1
assert SHAPE_INDICES == tuple(range(SHAPE_LO, SHAPE_HI))  # contiguous -> sliced in-kernel

PAIRS_PER_STEP = 128  # lane width of one batched grid step / output block


# -----------------------------------------------------------------------------
# Single-pair kernel: (2, N, P) f32 -> (1, 1) f32.  Pure VPU, no MXU, no mask.
# -----------------------------------------------------------------------------
def _vfg_symmetry_shape_kernel(ocms_ref, out_ref):
    ocms = ocms_ref[...]                                              # (2, N, P) f32
    n = ocms.shape[1]

    # Stable rank of every row within its group by the sort-key column.
    keys = ocms[:, :, SORT_COL]                                       # (2, N)
    ki = keys[:, :, None]                                             # (2, N, 1)
    kj = keys[:, None, :]                                             # (2, 1, N)
    ii = jax.lax.broadcasted_iota(jnp.int32, (n, n), 0)[None]         # (1, N, N)
    jj = jax.lax.broadcasted_iota(jnp.int32, (n, n), 1)[None]         # (1, N, N)
    before = (kj < ki) | ((kj == ki) & (jj < ii))                     # (2, N, N)
    rank = jnp.sum(before.astype(jnp.int32), axis=2)                  # (2, N) int32

    # g0 row i and g1 row j land at the same sorted position iff their ranks match.
    r_eq = rank[0][:, None] == rank[1][None, :]                       # (N, N)

    # Exact equality of the (contiguous) shape columns for every (i, j) pair.
    s0 = ocms[0, :, SHAPE_LO:SHAPE_HI]                                # (N, 3)
    s1 = ocms[1, :, SHAPE_LO:SHAPE_HI]                                # (N, 3)
    n_neq = jnp.sum((s0[:, None, :] != s1[None, :, :]).astype(jnp.int32), axis=2)
    shp_eq = n_neq == 0                                               # (N, N)

    bad = r_eq & jnp.logical_not(shp_eq)                              # matched but different
    n_bad = jnp.sum(bad.astype(jnp.int32), axis=(0, 1), keepdims=True)  # (1, 1)
    out_ref[...] = (n_bad == 0).astype(jnp.float32)                   # 1.0 iff all match


def vfg_symmetry_shape(group_data):
    """group_data: list of [N, P] float32 arrays (the 'ocms' of each group)."""
    if len(group_data) != 2:
        # Same (traced) array type as the kernel path -> consistent under jit/vmap.
        return jnp.zeros((), jnp.float32)
    ocms = jnp.stack([jnp.asarray(g, jnp.float32) for g in group_data], axis=0)  # (2, N, P)
    out = pl.pallas_call(
        _vfg_symmetry_shape_kernel,
        out_shape=jax.ShapeDtypeStruct((1, 1), jnp.float32),
        in_specs=[pl.BlockSpec(memory_space=pltpu.MemorySpace.VMEM)],
        out_specs=pl.BlockSpec(memory_space=pltpu.MemorySpace.VMEM),
    )(ocms)
    return out[0, 0]


# -----------------------------------------------------------------------------
# Batched kernel: many (g0, g1) pairs per call, batch on the lane axis.
# Input block (2, P, N, TB): property columns on an untiled axis (clean slices),
# (N, TB) = one vreg tile.  Output block (1, TB): lane-dense, unmasked store.
# -----------------------------------------------------------------------------
def _vfg_symmetry_shape_batched_kernel(x_ref, out_ref):
    x = x_ref[...]                                                    # (2, P, N, TB) f32
    n, tb = x.shape[2], x.shape[3]

    # Stable ranks per group by the sort-key column (tie-break: row index).
    keys = x[:, SORT_COL]                                             # (2, N, TB)
    ki = keys[:, :, None, :]                                          # (2, N, 1, TB)
    kj = keys[:, None, :, :]                                          # (2, 1, N, TB)
    ii = jax.lax.broadcasted_iota(jnp.int32, (n, n, tb), 0)           # (N, N, TB)
    jj = jax.lax.broadcasted_iota(jnp.int32, (n, n, tb), 1)           # (N, N, TB)
    tie = (jj < ii)[None]                                             # (1, N, N, TB)
    before = (kj < ki) | ((kj == ki) & tie)                           # (2, N, N, TB)
    rank = jnp.sum(before.astype(jnp.int32), axis=2)                  # (2, N, TB)

    # g0 row i and g1 row j share a sorted position iff ranks match.
    r_eq = rank[0][:, None, :] == rank[1][None, :, :]                 # (N, N, TB)

    # Exact equality of every shape column for every (i, j) row pair.
    shp_eq = None
    for c in range(SHAPE_LO, SHAPE_HI):
        eq_c = x[0, c][:, None, :] == x[1, c][None, :, :]             # (N, N, TB)
        shp_eq = eq_c if shp_eq is None else (shp_eq & eq_c)

    bad = r_eq & jnp.logical_not(shp_eq)                              # (N, N, TB)
    n_bad = jnp.sum(bad.astype(jnp.int32), axis=(0, 1))               # (TB,)
    out_ref[...] = (n_bad[None, :] == 0).astype(jnp.float32)          # (1, TB)


def vfg_symmetry_shape_batched(ocms_pairs):
    """ocms_pairs: (B, 2, N, P) f32 -> (B,) f32 valuations (one per pair)."""
    b, g, n, p = ocms_pairs.shape
    assert g == 2
    tb = PAIRS_PER_STEP

    # Layout plumbing only: (B, 2, N, P) -> (2, P, N, B), pad batch to lane multiple.
    x = jnp.transpose(ocms_pairs.astype(jnp.float32), (1, 3, 2, 0))   # (2, P, N, B)
    bp = pl.cdiv(b, tb) * tb
    if bp != b:
        x = jnp.pad(x, ((0, 0), (0, 0), (0, 0), (0, bp - b)))

    out = pl.pallas_call(
        _vfg_symmetry_shape_batched_kernel,
        out_shape=jax.ShapeDtypeStruct((1, bp), jnp.float32),
        grid=(bp // tb,),
        in_specs=[pl.BlockSpec((2, p, n, tb), lambda c: (0, 0, 0, c))],
        out_specs=pl.BlockSpec((1, tb), lambda c: (0, c)),
        compiler_params=pltpu.CompilerParams(dimension_semantics=("parallel",)),
    )(x)
    return out[0, :b]


# -----------------------------------------------------------------------------
# Pure-JAX references (stable argsort + exact equality), mirroring the module.
# -----------------------------------------------------------------------------
def _ref_pair(ocms):                                                  # ocms: (2, N, P)
    order0 = jnp.argsort(ocms[0, :, SORT_COL], stable=True)
    order1 = jnp.argsort(ocms[1, :, SORT_COL], stable=True)
    idx = jnp.array(SHAPE_INDICES)
    return jnp.all(ocms[0][order0][:, idx] == ocms[1][order1][:, idx]).astype(jnp.float32)


def vfg_symmetry_shape_ref(group_data):
    if len(group_data) != 2:
        return jnp.zeros((), jnp.float32)
    return _ref_pair(jnp.stack([jnp.asarray(g, jnp.float32) for g in group_data], axis=0))


if __name__ == "__main__":
    key = jax.random.PRNGKey(0)
    N_OBJS, N_PROPS = 8, 9
    k1, k2, k3, k4, k5 = jax.random.split(key, 5)

    # ---------- single pair (the module's forward) ----------
    sort_keys0 = jax.random.permutation(k1, jnp.arange(N_OBJS, dtype=jnp.float32)) * 0.5
    shape_cat = jax.random.randint(k2, (N_OBJS,), 0, 3)
    shape_onehot = jax.nn.one_hot(shape_cat, 3, dtype=jnp.float32)
    misc = jnp.round(jax.random.uniform(k3, (N_OBJS, N_PROPS)) * 4.0)

    g0 = misc.at[:, SORT_COL].set(sort_keys0)
    g0 = g0.at[:, SHAPE_LO:SHAPE_HI].set(shape_onehot)
    perm = jax.random.permutation(k4, jnp.arange(N_OBJS))
    g1 = g0[perm]                                    # permuted copy -> expect 1.0

    result = jax.block_until_ready(vfg_symmetry_shape([g0, g1]))
    ref = vfg_symmetry_shape_ref([g0, g1])
    assert float(result) == float(ref) == 1.0, (float(result), float(ref))

    g1_bad = g1.at[0, SHAPE_LO].set(1.0 - g1[0, SHAPE_LO])
    result_bad = jax.block_until_ready(vfg_symmetry_shape([g0, g1_bad]))
    ref_bad = vfg_symmetry_shape_ref([g0, g1_bad])
    assert float(result_bad) == float(ref_bad) == 0.0, (float(result_bad), float(ref_bad))

    # ---------- batched: many pairs in one gridded, lane-dense call ----------
    B = 256
    kg0, kcat, kmisc, kperm, kneg = jax.random.split(k5, 5)
    keys_b = jax.vmap(
        lambda k: jax.random.permutation(k, jnp.arange(N_OBJS, dtype=jnp.float32)) * 0.5
    )(jax.random.split(kg0, B))
    cat_b = jax.random.randint(kcat, (B, N_OBJS), 0, 3)
    g0_b = jnp.round(jax.random.uniform(kmisc, (B, N_OBJS, N_PROPS)) * 4.0)
    g0_b = g0_b.at[:, :, SORT_COL].set(keys_b)
    g0_b = g0_b.at[:, :, SHAPE_LO:SHAPE_HI].set(jax.nn.one_hot(cat_b, 3, dtype=jnp.float32))

    perms_b = jax.vmap(lambda k: jax.random.permutation(k, jnp.arange(N_OBJS)))(
        jax.random.split(kperm, B))
    g1_b = jnp.take_along_axis(g0_b, perms_b[:, :, None], axis=1)   # per-pair row permutation
    neg_cat = jax.random.randint(kneg, (B // 2, N_OBJS), 0, 3)
    g1_neg = g1_b[B // 2:].at[:, :, SHAPE_LO:SHAPE_HI].set(
        jax.nn.one_hot(neg_cat, 3, dtype=jnp.float32))
    g1_b = jnp.concatenate([g1_b[:B // 2], g1_neg], axis=0)

    pairs = jnp.stack([g0_b, g1_b], axis=1)                          # (B, 2, N, P)
    vals = jax.block_until_ready(vfg_symmetry_shape_batched(pairs))  # (B,)
    vals_ref = jax.vmap(_ref_pair)(pairs)
    assert vals.shape == (B,)
    assert bool(jnp.all(vals == vals_ref)), "batched kernel disagrees with reference"
    assert bool(jnp.all(vals[:B // 2] == 1.0))

    print("KERNEL_OK")
</pallas_src>

<mosaic_0001>
module attributes {stable_mosaic.version = 11 : i64} {
  func.func @_vfg_symmetry_shape_kernel(%arg0: memref<2x8x9xf32, #tpu.memory_space<vmem>>, %arg1: memref<1x1xf32, #tpu.memory_space<vmem>>) attributes {dimension_semantics = [], scalar_prefetch = 0 : i64, scratch_operands = 0 : i64, tpu.core_type = #tpu.core_type<tc>} {
    %c0 = arith.constant 0 : index
    %c0_0 = arith.constant 0 : index
    %c0_1 = arith.constant 0 : index
    %0 = vector.load %arg0[%c0, %c0_0, %c0_1] : memref<2x8x9xf32, #tpu.memory_space<vmem>>, vector<2x8x9xf32>
    %1 = vector.extract_strided_slice %0 {offsets = [0, 0, 1], sizes = [2, 8, 1], strides = [1, 1, 1]} : vector<2x8x9xf32> to vector<2x8x1xf32>
    %2 = vector.shape_cast %1 : vector<2x8x1xf32> to vector<2x8xf32>
    %3 = vector.shape_cast %2 : vector<2x8xf32> to vector<2x8x1xf32>
    %4 = vector.shape_cast %2 : vector<2x8xf32> to vector<2x1x8xf32>
    %5 = tpu.iota {dimensions = array<i32: 0>} : vector<8x8xi32>
    %6 = vector.shape_cast %5 : vector<8x8xi32> to vector<1x8x8xi32>
    %7 = tpu.iota {dimensions = array<i32: 1>} : vector<8x8xi32>
    %8 = vector.shape_cast %7 : vector<8x8xi32> to vector<1x8x8xi32>
    %9 = vector.broadcast %4 : vector<2x1x8xf32> to vector<2x8x8xf32>
    %10 = vector.broadcast %3 : vector<2x8x1xf32> to vector<2x8x8xf32>
    %11 = arith.cmpf olt, %9, %10 : vector<2x8x8xf32>
    %12 = vector.broadcast %4 : vector<2x1x8xf32> to vector<2x8x8xf32>
    %13 = vector.broadcast %3 : vector<2x8x1xf32> to vector<2x8x8xf32>
    %14 = arith.cmpf oeq, %12, %13 : vector<2x8x8xf32>
    %15 = arith.cmpi slt, %8, %6 : vector<1x8x8xi32>
    %16 = vector.broadcast %15 : vector<1x8x8xi1> to vector<2x8x8xi1>
    %17 = arith.andi %14, %16 : vector<2x8x8xi1>
    %18 = arith.ori %11, %17 : vector<2x8x8xi1>
    %19 = arith.extui %18 : vector<2x8x8xi1> to vector<2x8x8xi32>
    %cst = arith.constant dense<0> : vector<2x8xi32>
    %20 = vector.multi_reduction <add>, %19, %cst [2] : vector<2x8x8xi32> to vector<2x8xi32>
    %21 = vector.extract_strided_slice %20 {offsets = [0, 0], sizes = [1, 8], strides = [1, 1]} : vector<2x8xi32> to vector<1x8xi32>
    %22 = vector.shape_cast %21 : vector<1x8xi32> to vector<8xi32>
    %23 = vector.shape_cast %22 : vector<8xi32> to vector<8x1xi32>
    %24 = vector.extract_strided_slice %20 {offsets = [1, 0], sizes = [1, 8], strides = [1, 1]} : vector<2x8xi32> to vector<1x8xi32>
    %25 = vector.shape_cast %24 : vector<1x8xi32> to vector<8xi32>
    %26 = vector.shape_cast %25 : vector<8xi32> to vector<1x8xi32>
    %27 = vector.broadcast %23 : vector<8x1xi32> to vector<8x8xi32>
    %28 = vector.broadcast %26 : vector<1x8xi32> to vector<8x8xi32>
    %29 = arith.cmpi eq, %27, %28 : vector<8x8xi32>
    %30 = vector.extract_strided_slice %0 {offsets = [0, 0, 2], sizes = [1, 8, 3], strides = [1, 1, 1]} : vector<2x8x9xf32> to vector<1x8x3xf32>
    %31 = vector.shape_cast %30 : vector<1x8x3xf32> to vector<8x3xf32>
    %32 = vector.extract_strided_slice %0 {offsets = [1, 0, 2], sizes = [1, 8, 3], strides = [1, 1, 1]} : vector<2x8x9xf32> to vector<1x8x3xf32>
    %33 = vector.shape_cast %32 : vector<1x8x3xf32> to vector<8x3xf32>
    %34 = vector.shape_cast %31 : vector<8x3xf32> to vector<8x1x3xf32>
    %35 = vector.shape_cast %33 : vector<8x3xf32> to vector<1x8x3xf32>
    %36 = vector.broadcast %34 : vector<8x1x3xf32> to vector<8x8x3xf32>
    %37 = vector.broadcast %35 : vector<1x8x3xf32> to vector<8x8x3xf32>
    %38 = arith.cmpf one, %36, %37 : vector<8x8x3xf32>
    %39 = arith.extui %38 : vector<8x8x3xi1> to vector<8x8x3xi32>
    %cst_2 = arith.constant dense<0> : vector<8x8xi32>
    %40 = vector.multi_reduction <add>, %39, %cst_2 [2] : vector<8x8x3xi32> to vector<8x8xi32>
    %c0_i32 = arith.constant 0 : i32
    %41 = vector.broadcast %c0_i32 : i32 to vector<8x8xi32>
    %42 = arith.cmpi eq, %40, %41 : vector<8x8xi32>
    %cst_3 = arith.constant dense<true> : vector<8x8xi1>
    %43 = arith.xori %42, %cst_3 : vector<8x8xi1>
    %44 = arith.andi %29, %43 : vector<8x8xi1>
    %45 = arith.extui %44 : vector<8x8xi1> to vector<8x8xi32>
    %46 = vector.shape_cast %45 : vector<8x8xi32> to vector<1x8x8xi32>
    %cst_4 = arith.constant dense<0> : vector<1xi32>
    %47 = vector.multi_reduction <add>, %46, %cst_4 [1, 2] : vector<1x8x8xi32> to vector<1xi32>
    %48 = vector.shape_cast %47 : vector<1xi32> to vector<1x1x1xi32>
    %49 = vector.extract %48[0, 0, 0] : i32 from vector<1x1x1xi32>
    %50 = vector.broadcast %49 : i32 to vector<1x1xi32>
    %c0_i32_5 = arith.constant 0 : i32
    %51 = vector.broadcast %c0_i32_5 : i32 to vector<1x1xi32>
    %52 = arith.cmpi eq, %50, %51 : vector<1x1xi32>
    %53 = arith.extui %52 : vector<1x1xi1> to vector<1x1xi32>
    %54 = arith.sitofp %53 : vector<1x1xi32> to vector<1x1xf32>
    %c0_6 = arith.constant 0 : index
    %c0_7 = arith.constant 0 : index
    %55 = vector.load %arg1[%c0_6, %c0_7] : memref<1x1xf32, #tpu.memory_space<vmem>>, vector<1x1xf32>
    tpu.vector_store %arg1[%c0_6, %c0_7], %54 {strides = array<i32>} : memref<1x1xf32, #tpu.memory_space<vmem>>, vector<1x1xf32>,
    return
  }
}

</mosaic_0001>

<bundles_post_ra>
// kernel: tpu_custom_call.1
= control target key start
LH: loop header
LB: loop body
LE: loop exit
PB: predicated region body
PF: predicated region fallthrough
CT: control target
= control target key end

     0   :  { %6 = vsyncpa [#allocation3], 0  ;;  %s1139_s0 = inlined_call_operand.hbm [shape: f32[2,8,9], index: 0, kind: input, shape index: {}]   ;;  %s1140_s1 = inlined_call_operand.hbm [shape: f32[1,1], index: 1, kind: output, shape index: {}]  }
   0x1   :  { %7 = vsyncpa [#allocation4], 0  ;;  %s816_s6 = smov [#allocation2]   ;;  %s768_s10 = scalar_lea.hbm %s1139_s0, 256 }
   0x2   :  { %s13_s7 = sshll.u32 %s816_s6, 4  ;;  %p769_p0 = scmp.ne.s32.totalorder %s1139_s0, %s768_s10  ;;  %s14_s7 = int_to_ptr.vmem [resolvable:$true] %s13_s7 }
   0x3   :  { %p772_p1 = scmp.lt.u32.totalorder %s768_s10, %s1139_s0 }
   0x5   :  { %p774_p2 = pnand %p772_p1, %p769_p0 }
   0x7   :  { %777 = shalt.err (!%p774_p2)
}
   0x8   :  { %s778_s15 = scalar_lea.vmem %s14_s7, 256  ;;  %p783_p4 = scmp.lt.s32.totalorder %s14_s7, %s14_s7 }
   0x9   :  { %p779_p3 = scmp.ne.s32.totalorder %s14_s7, %s778_s15  ;;  %p784_p5 = scmp.lt.s32.totalorder %s778_s15, %s778_s15 }
   0xb   :  { %p785_p6 = por %p784_p5, %p783_p4 }
   0xd   :  { %p786_p7 = pnand %p785_p6, %p779_p3 }
   0xf   :  { %789 = shalt.err (!%p786_p7)
}
  0x10   :  { %s817_s16 = smov 128   ;;  %s818_s17 = smov 8  }
  0x11   :  { %19 = dma.hbm_to_vmem [thread:$0]  %s1139_s0, 256, %s14_s7, [#allocation3], %s817_s16, %s817_s16, %s818_s17  }
  0x12   :  { %812 = dma.done.wait [#allocation3], 256  }
  0x13   :  { %813 = vsyncadd [#allocation3], 4294967040  ;;  %v25_v0 = vlaneseq  ;;  %v819_v1 = vmov 1   ;;  %v820_v7 = vmov 0   ;;  %v861_v10 = vld [vmem:[#allocation2 + $0x8] sm:$0xff]  ;;  %v869_v14 = vld [vmem:[#allocation2] sm:$0xff] }
  0x14   :  { %765 = vset.pattern.permute.xlu0 %v819_v1  ;;  %766 = vset.pattern.permute.xlu1 %v819_v1  ;;  %s823_s0 = smov [#allocation5]  }
  0x15   :  { %v847_v2 = vshrl.u32 %v25_v0, 7  ;;  %v28_v3 = vand.u32 127, %v25_v0  ;;  %35 = vperm.xlu0 %765, %v861_v10   ;;  %v821_v0 = vmov 1966171168   ;;  %s744_s20 = sshll.u32 %s823_s0, 4  ;;  %s745_s20 = int_to_ptr.vmem [resolvable:$true] %s744_s20 }
  0x16   :  { %v438_v1 = vunpack.c.l.s4 %v821_v0  ;;  %s790_s22 = scalar_lea.vmem %s745_s20, 16  ;;  %s794_s23 = scalar_lea.vmem %s745_s20, 32 }
  0x17   :  { %v850_v4 = vsub.s32 0, %v847_v2  ;;  %vm149_vm0 = vcmp.lt.s32.totalorder %v28_v3, %v847_v2  ;;  %v854_v5 = vsub.s32 %v28_v3, %v847_v2  ;;  %v857_v6 = vsub.s32 1, %v847_v2  ;;  %p791_p8 = scmp.ne.s32.totalorder %s745_s20, %s790_s22  ;;  %p795_p9 = scmp.lt.s32.totalorder %s745_s20, %s745_s20 }
  0x18   :  { %v152_v8 = vsel %vm149_vm0, 1, %v820_v7  ;;  %v866_v12 = vsub.s32 3, %v847_v2  ;;  %v47_v13 = vsub.s32 2, %v847_v2  ;;  %v874_v16 = vsub.s32 5, %v847_v2  ;;  %p796_p10 = scmp.lt.s32.totalorder %s794_s23, %s790_s22 }
  0x19   :  { %v156_v9 = vrot.slane %v152_v8, %v850_v4  ;;  %v163_v11 = vrot.slane %v152_v8, %v857_v6  ;;  %31 = vperm.xlu0 %765, %v869_v14   ;;  %v877_v18 = vsub.s32 4, %v847_v2  ;;  %v881_v20 = vsub.s32 7, %v847_v2 }
  0x1a   :  { %v177_v15 = vrot.slane %v152_v8, %v866_v12  ;;  %v170_v17 = vrot.slane %v152_v8, %v47_v13  ;;  %v191_v19 = vrot.slane %v152_v8, %v874_v16  ;;  %v885_v22 = vsub.s32 6, %v847_v2  ;;  %p797_p11 = por %p796_p10, %p795_p9 }
  0x1b   :  { %158 = vbcast.lane.b32.xlu1 %v156_v9, 256  ;;  %v184_v21 = vrot.slane %v152_v8, %v877_v18  ;;  %v205_v23 = vrot.slane %v152_v8, %v881_v20  ;;  %v439_v9 = vunpack.c.0.s8 %v438_v1 }
  0x1c   :  { %v198_v24 = vrot.slane %v152_v8, %v885_v22  ;;  %p798_p12 = pnand %p797_p11, %p791_p8 }
  0x1d   :  { %172 = vbcast.lane.b32.xlu0 %v170_v17, 256 }
  0x1f   :  { %165 = vbcast.lane.b32.xlu1 %v163_v11, 256 }
  0x21   :  { %186 = vbcast.lane.b32.xlu0 %v184_v21, 256 }
  0x23   :  { %179 = vbcast.lane.b32.xlu1 %v177_v15, 256 }
  0x25   :  { %200 = vbcast.lane.b32.xlu0 %v198_v24, 256 }
  0x27   :  { %193 = vbcast.lane.b32.xlu1 %v191_v19, 256 }
  0x2b   :  { %207 = vbcast.lane.b32.xlu1 %v205_v23, 256  ;;  %v436_v23 = vcombine.high %v869_v14, %v869_v14 }
  0x8d   :  { %v159_v25 = vpop.permute.xlu1 %158 }
  0x8e   :  { %vm209_vm5 = vcmp.ne.s32.totalorder %v159_v25, 0 }
  0x91   :  { %v889_v26 = vpop.permute.xlu1 %165 }
  0x92   :  { %vm210_vm1 = vcmp.ne.s32.totalorder %v889_v26, 0 }
  0x94   :  { %v891_v27 = vpop.permute.xlu0 %35 }
  0x95   :  { %v76_v28 = vrot.slane %v891_v27, %v857_v6  ;;  %v72_v29 = vrot.slane %v891_v27, %v850_v4  ;;  %v80_v31 = vrot.slane %v891_v27, %v47_v13  ;;  %v84_v38 = vrot.slane %v891_v27, %v866_v12  ;;  %v180_v39 = vpop.permute.xlu1 %179 }
  0x96   :  { %v88_v40 = vrot.slane %v891_v27, %v877_v18  ;;  %v96_v47 = vrot.slane %v891_v27, %v885_v22  ;;  %v92_v48 = vrot.slane %v891_v27, %v874_v16  ;;  %v100_v52 = vrot.slane %v891_v27, %v881_v20 }
  0x97   :  { %vm142_vm2 = vcmp.eq.f32.partialorder %v861_v10, %v76_v28  ;;  %vm126_vm3 = vcmp.lt.f32.partialorder %v861_v10, %v76_v28  ;;  %vm141_vm6 = vcmp.eq.f32.partialorder %v861_v10, %v72_v29  ;;  %vm125_vm7 = vcmp.lt.f32.partialorder %v861_v10, %v72_v29 }
  0x98   :  { %v899_v30 = vpop.permute.xlu0 %31  ;;  %vm226_vm4 = vmand %vm142_vm2, %vm210_vm1  ;;  %vm143_vm12 = vcmp.eq.f32.partialorder %v861_v10, %v80_v31  ;;  %vm127_vm15 = vcmp.lt.f32.partialorder %v861_v10, %v80_v31 }
  0x99   :  { %vm242_vm8 = vmor %vm126_vm3, %vm226_vm4  ;;  %v40_v32 = vrot.slane %v899_v30, %v850_v4  ;;  %v48_v36 = vrot.slane %v899_v30, %v47_v13  ;;  %v44_v45 = vrot.slane %v899_v30, %v857_v6  ;;  %v943_v46 = vpop.permute.xlu1 %193  ;;  %v52_v50 = vrot.slane %v899_v30, %v866_v12 }
  0x9a   :  { %v258_v33 = vsel %vm242_vm8, 1, %v820_v7  ;;  %vm225_vm9 = vmand %vm141_vm6, %vm209_vm5  ;;  %v56_v57 = vrot.slane %v899_v30, %v877_v18  ;;  %v68_v58 = vrot.slane %v899_v30, %v881_v20  ;;  %v60_v60 = vrot.slane %v899_v30, %v874_v16 }
  0x9b   :  { %293 = vperm.xlu1 %766, %v258_v33   ;;  %vm241_vm10 = vmor %vm125_vm7, %vm225_vm9  ;;  %vm133_vm14 = vcmp.eq.f32.partialorder %v869_v14, %v40_v32  ;;  %vm117_vm0 = vcmp.lt.f32.partialorder %v869_v14, %v40_v32  ;;  %vm212_vm7 = vcmp.ne.s32.totalorder %v180_v39, 0  ;;  %vm135_vm8 = vcmp.eq.f32.partialorder %v869_v14, %v48_v36 }
  0x9c   :  { %v173_v34 = vpop.permute.xlu0 %172  ;;  %v257_v35 = vsel %vm241_vm10, 1, %v820_v7  ;;  %vm217_vm3 = vmand %vm133_vm14, %vm209_vm5  ;;  %vm144_vm9 = vcmp.eq.f32.partialorder %v861_v10, %v84_v38  ;;  %vm145_vm5 = vcmp.eq.f32.partialorder %v861_v10, %v88_v40  ;;  %v64_v3 = vrot.slane %v899_v30, %v885_v22 }
  0x9d   :  { %vm211_vm11 = vcmp.ne.s32.totalorder %v173_v34, 0  ;;  %290 = vperm.xlu0 %765, %v257_v35   ;;  %vm233_vm4 = vmor %vm117_vm0, %vm217_vm3  ;;  %v208_v54 = vpop.permute.xlu1 %207  ;;  %v442_v13 = vsub.s32 %v439_v9, %v847_v2 }
  0x9e   :  { %vm227_vm13 = vmand %vm143_vm12, %vm211_vm11  ;;  %v249_v42 = vsel %vm233_vm4, 1, %v820_v7  ;;  %vm128_vm12 = vcmp.lt.f32.partialorder %v861_v10, %v84_v38  ;;  %vm134_vm4 = vcmp.eq.f32.partialorder %v869_v14, %v44_v45 }
  0x9f   :  { %vm243_vm2 = vmor %vm127_vm15, %vm227_vm13  ;;  %266 = vperm.xlu1 %766, %v249_v42   ;;  %vm129_vm15 = vcmp.lt.f32.partialorder %v861_v10, %v88_v40  ;;  %v443_v16 = vrot.slane %v869_v14, %v442_v13  ;;  %v450_v27 = vrot.slane %v436_v23, %v442_v13 }
  0xa0   :  { %v918_v37 = vpop.permute.xlu0 %186  ;;  %v259_v41 = vsel %vm243_vm2, 1, %v820_v7  ;;  %vm931_vm10 = vmand %vm135_vm8, %vm211_vm11  ;;  %vm119_vm2 = vcmp.lt.f32.partialorder %v869_v14, %v48_v36 }
  0xa1   :  { %296 = vperm.xlu0 %765, %v259_v41   ;;  %vm1142_vm6 = vcmp.ne.s32.totalorder %v918_v37, 0  ;;  %vm228_vm14 = vmand %vm144_vm9, %vm212_vm7  ;;  %vm147_vm9 = vcmp.eq.f32.partialorder %v861_v10, %v96_v47  ;;  %v451_v17 = vcombine.high %v443_v16, %v443_v16  ;;  %v459_v19 = vrot.slane %v443_v16, %v442_v13 }
  0xa2   :  { %vm229_vm13 = vmand %vm145_vm5, %vm1142_vm6  ;;  %vm118_vm5 = vcmp.lt.f32.partialorder %v869_v14, %v44_v45  ;;  %vm216_vm6 = vcmp.ne.s32.totalorder %v208_v54, 0  ;;  %v466_v33 = vrot.slane %v450_v27, %v442_v13 }
  0xa3   :  { %vm244_vm11 = vmor %vm128_vm12, %vm228_vm14  ;;  %vm214_vm12 = vcmp.ne.s32.totalorder %v943_v46, 0  ;;  %v473_v18 = vrot.slane %v451_v17, %v442_v13  ;;  %v488_v21 = vrot.slane %v459_v19, %v850_v4  ;;  %v481_v22 = vcombine.high %v459_v19, %v459_v19 }
  0xa4   :  { %v939_v44 = vpop.permute.xlu0 %200  ;;  %v260_v49 = vsel %vm244_vm11, 1, %v820_v7  ;;  %vm245_vm3 = vmor %vm129_vm15, %vm229_vm13  ;;  %vm130_vm11 = vcmp.lt.f32.partialorder %v861_v10, %v92_v48  ;;  %v504_v38 = vrot.slane %v466_v33, %v850_v4  ;;  %v482_v46 = vcombine.high %v466_v33, %v466_v33 }
  0xa5   :  { %vm1141_vm0 = vcmp.ne.s32.totalorder %v939_v44, 0  ;;  %299 = vperm.xlu1 %766, %v260_v49   ;;  %vm959_vm8 = vmor %vm119_vm2, %vm931_vm10  ;;  %vm146_vm10 = vcmp.eq.f32.partialorder %v861_v10, %v92_v48  ;;  %v261_v55 = vsel %vm245_vm3, 1, %v820_v7  ;;  %vm136_vm2 = vcmp.eq.f32.partialorder %v869_v14, %v52_v50 }
  0xa6   :  { %vm970_vm13 = vmand %vm147_vm9, %vm1141_vm0  ;;  %vm148_vm0 = vcmp.eq.f32.partialorder %v861_v10, %v100_v52  ;;  %vm131_vm3 = vcmp.lt.f32.partialorder %v861_v10, %v96_v47  ;;  %v251_v61 = vsel %vm959_vm8, 1, %v820_v7  ;;  %vm124_vm8 = vcmp.lt.f32.partialorder %v869_v14, %v68_v58 }
  0xa7   :  { %vm218_vm14 = vmand %vm134_vm4, %vm210_vm1  ;;  %vm120_vm4 = vcmp.lt.f32.partialorder %v869_v14, %v52_v50  ;;  %v492_v20 = vrot.slane %v473_v18, %v850_v4  ;;  %v496_v2 = vrot.slane %v481_v22, %v850_v4  ;;  %v483_v26 = vcombine.high %v473_v18, %v473_v18 }
  0xa8   :  { %vm234_vm15 = vmor %vm118_vm5, %vm218_vm14  ;;  %v512_v53 = vrot.slane %v482_v46, %v850_v4 }
  0xa9   :  { %302 = vperm.xlu1 %766, %v261_v55   ;;  %v250_v56 = vsel %vm234_vm15, 1, %v820_v7  ;;  %vm230_vm9 = vmand %vm146_vm10, %vm214_vm12  ;;  %v500_v31 = vrot.slane %v483_v26, %v850_v4 }
  0xaa   :  { %269 = vperm.xlu0 %765, %v250_v56   ;;  %vm246_vm1 = vmor %vm130_vm11, %vm230_vm9  ;;  %vm137_vm11 = vcmp.eq.f32.partialorder %v869_v14, %v56_v57  ;;  %vm140_vm9 = vcmp.eq.f32.partialorder %v869_v14, %v68_v58 }
  0xab   :  { %v262_v59 = vsel %vm246_vm1, 1, %v820_v7  ;;  %vm220_vm5 = vmand %vm136_vm2, %vm212_vm7  ;;  %vm132_vm7 = vcmp.lt.f32.partialorder %v861_v10, %v100_v52 }
  0xac   :  { %vm247_vm10 = vmor %vm131_vm3, %vm970_vm13  ;;  %vm1149_vm13 = vcmp.ne.s32.totalorder %v918_v37, 0  ;;  %vm121_vm3 = vcmp.lt.f32.partialorder %v869_v14, %v56_v57 }
  0xad   :  { %305 = vperm.xlu1 %766, %v262_v59   ;;  %vm232_vm14 = vmand %vm148_vm0, %vm216_vm6  ;;  %v263_v62 = vsel %vm247_vm10, 1, %v820_v7  ;;  %vm138_vm0 = vcmp.eq.f32.partialorder %v869_v14, %v60_v60  ;;  %vm122_vm10 = vcmp.lt.f32.partialorder %v869_v14, %v60_v60 }
  0xae   :  { %272 = vperm.xlu0 %765, %v251_v61   ;;  %vm236_vm15 = vmor %vm120_vm4, %vm220_vm5 }
  0xaf   :  { %vm221_vm2 = vmand %vm137_vm11, %vm1149_vm13  ;;  %v252_v63 = vsel %vm236_vm15, 1, %v820_v7  ;;  %vm123_vm13 = vcmp.lt.f32.partialorder %v869_v14, %v64_v3 }
  0xb0   :  { %vm248_vm1 = vmor %vm132_vm7, %vm232_vm14 }
  0xb1   :  { %308 = vperm.xlu1 %766, %v263_v62   ;;  %vm224_vm4 = vmand %vm140_vm9, %vm216_vm6  ;;  %v264_v6 = vsel %vm248_vm1, 1, %v820_v7  ;;  %vm139_vm6 = vcmp.eq.f32.partialorder %v869_v14, %v64_v3  ;;  %vm1150_vm9 = vcmp.ne.s32.totalorder %v939_v44, 0  ;;  %vm525_vm1 = vcmp.ne.f32.partialorder %v488_v21, %v861_v10 }
  0xb2   :  { %vm237_vm5 = vmor %vm121_vm3, %vm221_vm2  ;;  %275 = vperm.xlu0 %765, %v252_v63   ;;  %vm526_vm2 = vcmp.ne.f32.partialorder %v492_v20, %v861_v10  ;;  %v533_v25 = vsel %vm525_vm1, 1, %v820_v7  ;;  %vm527_vm3 = vcmp.ne.f32.partialorder %v496_v2, %v861_v10  ;;  %v452_v14 = vcombine.high %v450_v27, %v450_v27 }
  0xb3   :  { %vm222_vm14 = vmand %vm138_vm0, %vm214_vm12  ;;  %v253_v8 = vsel %vm237_vm5, 1, %v820_v7  ;;  %v534_v24 = vsel %vm526_vm2, 1, %v820_v7  ;;  %vm541_vm0 = vcmask 39952   ;;  %v535_v30 = vsel %vm527_vm3, 1, %v820_v7 }
  0xb4   :  { %vm240_vm11 = vmor %vm124_vm8, %vm224_vm4  ;;  %v555_v28 = vsel %vm541_vm0, %v534_v24, 0  ;;  %v542_v29 = vsel %vm541_vm0, %v533_v25, 0  ;;  %v568_v35 = vsel %vm541_vm0, %v535_v30, 0  ;;  %vm528_vm8 = vcmp.ne.f32.partialorder %v500_v31, %v861_v10 }
  0xb5   :  { %311 = vperm.xlu1 %766, %v264_v6   ;;  %vm238_vm15 = vmor %vm122_vm10, %vm222_vm14  ;;  %v256_v11 = vsel %vm240_vm11, 1, %v820_v7  ;;  %v557_v32 = vshrl.u32 %v555_v28, 16  ;;  %v544_v34 = vshrl.u32 %v542_v29, 16  ;;  %v556_v37 = vand.u32 65535, %v555_v28 }
  0xb6   :  { %278 = vperm.xlu0 %765, %v253_v8   ;;  %vm223_vm7 = vmand %vm139_vm6, %vm1150_vm9  ;;  %v254_v12 = vsel %vm238_vm15, 1, %v820_v7  ;;  %v480_v39 = vrot.slane %v452_v14, %v442_v13  ;;  %v570_v41 = vshrl.u32 %v568_v35, 16  ;;  %v536_v42 = vsel %vm528_vm8, 1, %v820_v7 }
  0xb7   :  { %vm239_vm12 = vmor %vm123_vm13, %vm223_vm7  ;;  %v559_v36 = vcvt.s32.f32 %v557_v32  ;;  %v546_v40 = vcvt.s32.f32 %v544_v34  ;;  %v569_v43 = vand.u32 65535, %v568_v35  ;;  %v558_v44 = vcvt.s32.f32 %v556_v37 }
  0xb8   :  { %v255_v15 = vsel %vm239_vm12, 1, %v820_v7  ;;  %vm529_vm4 = vcmp.ne.f32.partialorder %v504_v38, %v861_v10  ;;  %v508_v45 = vrot.slane %v480_v39, %v850_v4  ;;  %v572_v47 = vcvt.s32.f32 %v570_v41 }
  0xb9   :  { %287 = vperm.xlu1 %766, %v256_v11   ;;  %v543_v48 = vand.u32 65535, %v542_v29  ;;  %v581_v49 = vsel %vm541_vm0, %v536_v42, 0  ;;  %v571_v50 = vcvt.s32.f32 %v569_v43  ;;  %v537_v51 = vsel %vm529_vm4, 1, %v820_v7 }
  0xba   :  { %281 = vperm.xlu0 %765, %v254_v12   ;;  %v582_v52 = vand.u32 65535, %v581_v49  ;;  %vm530_vm5 = vcmp.ne.f32.partialorder %v508_v45, %v861_v10  ;;  %v484_v54 = vcombine.high %v480_v39, %v480_v39  ;;  %v583_v56 = vshrl.u32 %v581_v49, 16 }
  0xbb   :  { %v545_v55 = vcvt.s32.f32 %v543_v48  ;;  %v594_v57 = vsel %vm541_vm0, %v537_v51, 0  ;;  %v538_v58 = vsel %vm530_vm5, 1, %v820_v7  ;;  %vm531_vm10 = vcmp.ne.f32.partialorder %v512_v53, %v861_v10 }
  0xbc   :  { %v584_v59 = vcvt.s32.f32 %v582_v52  ;;  %v595_v60 = vand.u32 65535, %v594_v57  ;;  %v516_v61 = vrot.slane %v484_v54, %v850_v4  ;;  %v585_v62 = vcvt.s32.f32 %v583_v56 }
  0xbd   :  { %v596_v63 = vshrl.u32 %v594_v57, 16  ;;  %v607_v0 = vsel %vm541_vm0, %v538_v58, 0  ;;  %v539_v1 = vsel %vm531_vm10, 1, %v820_v7  ;;  %vm377_vm11 = vcmask 1041409  }
  0xbe   :  { %284 = vperm.xlu0 %765, %v255_v15   ;;  %v597_v3 = vcvt.s32.f32 %v595_v60  ;;  %v608_v6 = vand.u32 65535, %v607_v0  ;;  %vm532_vm14 = vcmp.ne.f32.partialorder %v516_v61, %v861_v10  ;;  %v609_v9 = vshrl.u32 %v607_v0, 16 }
  0xbf   :  { %v598_v8 = vcvt.s32.f32 %v596_v63  ;;  %v620_v11 = vsel %vm541_vm0, %v539_v1, 0  ;;  %v540_v12 = vsel %vm532_vm14, 1, %v820_v7  ;;  %vm379_vm6 = vcmask 1042434  }
  0xc0   :  { %v610_v4 = vcvt.s32.f32 %v608_v6  ;;  %v621_v13 = vand.u32 65535, %v620_v11  ;;  %v611_v15 = vcvt.s32.f32 %v609_v9  ;;  %v622_v16 = vshrl.u32 %v620_v11, 16 }
  0xc1   :  { %v633_v17 = vsel %vm541_vm0, %v540_v12, 0  ;;  %vm381_vm15 = vcmask 1043459   ;;  %vm383_vm9 = vcmask 1044484   ;;  %vm385_vm7 = vcmask 1045509  }
  0xc2   :  { %v623_v18 = vcvt.s32.f32 %v621_v13  ;;  %v624_v19 = vcvt.s32.f32 %v622_v16  ;;  %v635_v10 = vshrl.u32 %v633_v17, 16  ;;  %v634_v21 = vand.u32 65535, %v633_v17 }
  0xc3   :  { %vm387_vm13 = vcmask 1046534   ;;  %vm389_vm12 = vcmask 1047559   ;;  %vm398_vm2 = vcmask 64512   ;;  %vm822_vm3 = vmmov 1  }
  0xc4   :  { %v637_v20 = vcvt.s32.f32 %v635_v10  ;;  %v636_v22 = vcvt.s32.f32 %v634_v21 }
  0xdd   :  { %562 = vadd.xlane.f32.xlu1 %v559_v36  ;;  %549 = vadd.xlane.f32.xlu0 %v546_v40 }
  0xe1   :  { %560 = vadd.xlane.f32.xlu1 %v558_v44  ;;  %575 = vadd.xlane.f32.xlu0 %v572_v47 }
  0xe5   :  { %573 = vadd.xlane.f32.xlu1 %v571_v50  ;;  %547 = vadd.xlane.f32.xlu0 %v545_v55 }
  0xe9   :  { %586 = vadd.xlane.f32.xlu1 %v584_v59  ;;  %588 = vadd.xlane.f32.xlu0 %v585_v62 }
  0xed   :  { %599 = vadd.xlane.f32.xlu1 %v597_v3  ;;  %601 = vadd.xlane.f32.xlu0 %v598_v8 }
  0xf1   :  { %612 = vadd.xlane.f32.xlu1 %v610_v4  ;;  %614 = vadd.xlane.f32.xlu0 %v611_v15 }
  0xf5   :  { %625 = vadd.xlane.f32.xlu1 %v623_v18  ;;  %627 = vadd.xlane.f32.xlu0 %v624_v19 }
  0xf9   :  { %640 = vadd.xlane.f32.xlu0 %v637_v20 }
  0xfd   :  { %638 = vadd.xlane.f32.xlu0 %v636_v22 }
 0x11a   :  { %v294_v2 = vpop.permute.xlu1 %293 }
 0x11b   :  { %v352_v29 = vrot.slane %v294_v2, %v854_v5 }
 0x11c   :  { %v291_v24 = vpop.permute.xlu0 %290 }
 0x11d   :  { %v348_v30 = vrot.slane %v291_v24, %v854_v5 }
 0x11e   :  { %v267_v23 = vpop.permute.xlu1 %266 }
 0x11f   :  { %v391_v14 = vsel %vm377_vm11, %v352_v29, %v348_v30  ;;  %v316_v53 = vrot.slane %v267_v23, %v854_v5 }
 0x120   :  { %v297_v25 = vpop.permute.xlu0 %296 }
 0x121   :  { %v356_v31 = vrot.slane %v297_v25, %v854_v5 }
 0x123   :  { %v392_v35 = vsel %vm379_vm6, %v356_v31, %v391_v14 }
 0x124   :  { %v300_v26 = vpop.permute.xlu1 %299 }
 0x125   :  { %v360_v34 = vrot.slane %v300_v26, %v854_v5 }
 0x127   :  { %v393_v41 = vsel %vm381_vm15, %v360_v34, %v392_v35 }
 0x128   :  { %v303_v27 = vpop.permute.xlu1 %302 }
 0x129   :  { %v270_v28 = vpop.permute.xlu0 %269  ;;  %v364_v36 = vrot.slane %v303_v27, %v854_v5 }
 0x12a   :  { %v320_v49 = vrot.slane %v270_v28, %v854_v5 }
 0x12b   :  { %v394_v42 = vsel %vm383_vm9, %v364_v36, %v393_v41 }
 0x12c   :  { %v306_v32 = vpop.permute.xlu1 %305  ;;  %v378_v59 = vsel %vm377_vm11, %v320_v49, %v316_v53 }
 0x12d   :  { %v273_v33 = vpop.permute.xlu0 %272  ;;  %v368_v38 = vrot.slane %v306_v32, %v854_v5 }
 0x12e   :  { %v324_v51 = vrot.slane %v273_v33, %v854_v5 }
 0x12f   :  { %v395_v44 = vsel %vm385_vm7, %v368_v38, %v394_v42 }
 0x130   :  { %v309_v37 = vpop.permute.xlu1 %308  ;;  %v380_v61 = vsel %vm379_vm6, %v324_v51, %v378_v59 }
 0x131   :  { %v276_v39 = vpop.permute.xlu0 %275  ;;  %v372_v40 = vrot.slane %v309_v37, %v854_v5 }
 0x132   :  { %v328_v54 = vrot.slane %v276_v39, %v854_v5 }
 0x133   :  { %v396_v46 = vsel %vm387_vm13, %v372_v40, %v395_v44 }
 0x134   :  { %v312_v43 = vpop.permute.xlu1 %311  ;;  %v382_v63 = vsel %vm381_vm15, %v328_v54, %v380_v61 }
 0x135   :  { %v376_v45 = vrot.slane %v312_v43, %v854_v5  ;;  %v279_v47 = vpop.permute.xlu0 %278 }
 0x136   :  { %v332_v56 = vrot.slane %v279_v47, %v854_v5 }
 0x137   :  { %v397_v48 = vsel %vm389_vm12, %v376_v45, %v396_v46 }
 0x138   :  { %v412_v50 = vsel %vm398_vm2, %v397_v48, 0  ;;  %v288_v62 = vpop.permute.xlu1 %287  ;;  %v384_v1 = vsel %vm383_vm9, %v332_v56, %v382_v63 }
 0x139   :  { %v414_v52 = vshrl.u32 %v412_v50, 16  ;;  %v282_v55 = vpop.permute.xlu0 %281  ;;  %v413_v58 = vand.u32 65535, %v412_v50  ;;  %v344_v9 = vrot.slane %v288_v62, %v854_v5 }
 0x13a   :  { %v336_v60 = vrot.slane %v282_v55, %v854_v5 }
 0x13b   :  { %v416_v57 = vcvt.s32.f32 %v414_v52  ;;  %v415_v6 = vcvt.s32.f32 %v413_v58 }
 0x13c   :  { %v386_v8 = vsel %vm385_vm7, %v336_v60, %v384_v1 }
 0x13d   :  { %419 = vadd.xlane.f32.xlu1 %v416_v57  ;;  %v285_v0 = vpop.permute.xlu0 %284 }
 0x13e   :  { %v340_v3 = vrot.slane %v285_v0, %v854_v5 }
 0x140   :  { %v388_v11 = vsel %vm387_vm13, %v340_v3, %v386_v8 }
 0x141   :  { %417 = vadd.xlane.f32.xlu1 %v415_v6  ;;  %v390_v12 = vsel %vm389_vm12, %v344_v9, %v388_v11 }
 0x142   :  { %v399_v4 = vsel %vm398_vm2, %v390_v12, 0 }
 0x143   :  { %v401_v13 = vshrl.u32 %v399_v4, 16  ;;  %v400_v16 = vand.u32 65535, %v399_v4 }
 0x145   :  { %v403_v15 = vcvt.s32.f32 %v401_v13  ;;  %v402_v17 = vcvt.s32.f32 %v400_v16 }
 0x147   :  { %406 = vadd.xlane.f32.xlu0 %v403_v15 }
 0x14b   :  { %404 = vadd.xlane.f32.xlu0 %v402_v17 }
 0x16a   :  { %v550_v18 = vpop.xlane.xlu0 %549  ;;  %v563_v10 = vpop.xlane.xlu1 %562 }
 0x16b   :  { %v565_v25 = vcvt.f32.s32 %v563_v10  ;;  %v552_v26 = vcvt.f32.s32 %v550_v18 }
 0x16d   :  { %v566_v29 = vshll.u32 %v565_v25, 16  ;;  %v553_v31 = vshll.u32 %v552_v26, 16 }
 0x16e   :  { %v576_v19 = vpop.xlane.xlu0 %575  ;;  %v561_v21 = vpop.xlane.xlu1 %560 }
 0x16f   :  { %v578_v28 = vcvt.f32.s32 %v576_v19  ;;  %v564_v30 = vcvt.f32.s32 %v561_v21 }
 0x171   :  { %v579_v34 = vshll.u32 %v578_v28, 16  ;;  %v567_v35 = vadd.s32 %v566_v29, %v564_v30 }
 0x172   :  { %v548_v20 = vpop.xlane.xlu0 %547  ;;  %v574_v2 = vpop.xlane.xlu1 %573 }
 0x173   :  { %v551_v32 = vcvt.f32.s32 %v548_v20  ;;  %v577_v36 = vcvt.f32.s32 %v574_v2  ;;  %vm647_vm1 = vcmp.eq.s32.totalorder %v567_v35, 0 }
 0x174   :  { %vm655_vm8 = vmxor %vm647_vm1, %vm822_vm3 }
 0x175   :  { %v554_v38 = vadd.s32 %v553_v31, %v551_v32  ;;  %v580_v43 = vadd.s32 %v579_v34, %v577_v36  ;;  %v663_v55 = vsel %vm655_vm8, 1, %v820_v7 }
 0x176   :  { %v589_v22 = vpop.xlane.xlu0 %588  ;;  %v587_v24 = vpop.xlane.xlu1 %586  ;;  %v677_v62 = vrot.slane %v663_v55, %v854_v5 }
 0x177   :  { %v591_v14 = vcvt.f32.s32 %v589_v22  ;;  %v590_v41 = vcvt.f32.s32 %v587_v24  ;;  %vm646_vm0 = vcmp.eq.s32.totalorder %v554_v38, 0  ;;  %vm648_vm5 = vcmp.eq.s32.totalorder %v580_v43, 0 }
 0x178   :  { %vm654_vm4 = vmxor %vm646_vm0, %vm822_vm3 }
 0x179   :  { %v592_v40 = vshll.u32 %v591_v14, 16  ;;  %v662_v54 = vsel %vm654_vm4, 1, %v820_v7  ;;  %vm656_vm10 = vmxor %vm648_vm5, %vm822_vm3 }
 0x17a   :  { %v602_v23 = vpop.xlane.xlu0 %601  ;;  %v600_v33 = vpop.xlane.xlu1 %599  ;;  %v673_v61 = vrot.slane %v662_v54, %v854_v5  ;;  %v664_v63 = vsel %vm656_vm10, 1, %v820_v7  ;;  %v824_v54 = vmov 0.0  }
 0x17b   :  { %v604_v39 = vcvt.f32.s32 %v602_v23  ;;  %v603_v46 = vcvt.f32.s32 %v600_v33  ;;  %v593_v48 = vadd.s32 %v592_v40, %v590_v41  ;;  %v681_v6 = vrot.slane %v664_v63, %v854_v5 }
 0x17c   :  { %v702_v9 = vsel %vm377_vm11, %v677_v62, %v673_v61 }
 0x17d   :  { %v605_v45 = vshll.u32 %v604_v39, 16  ;;  %vm649_vm14 = vcmp.eq.s32.totalorder %v593_v48, 0  ;;  %v703_v15 = vsel %vm379_vm6, %v681_v6, %v702_v9 }
 0x17e   :  { %v615_v27 = vpop.xlane.xlu0 %614  ;;  %v613_v42 = vpop.xlane.xlu1 %612  ;;  %vm657_vm1 = vmxor %vm649_vm14, %vm822_vm3 }
 0x17f   :  { %v617_v44 = vcvt.f32.s32 %v615_v27  ;;  %v616_v51 = vcvt.f32.s32 %v613_v42  ;;  %v606_v53 = vadd.s32 %v605_v45, %v603_v46  ;;  %v665_v8 = vsel %vm657_vm1, 1, %v820_v7 }
 0x180   :  { %v685_v12 = vrot.slane %v665_v8, %v854_v5 }
 0x181   :  { %v618_v50 = vshll.u32 %v617_v44, 16  ;;  %vm650_vm0 = vcmp.eq.s32.totalorder %v606_v53, 0 }
 0x182   :  { %v628_v37 = vpop.xlane.xlu0 %627  ;;  %v626_v52 = vpop.xlane.xlu1 %625  ;;  %vm658_vm8 = vmxor %vm650_vm0, %vm822_vm3  ;;  %v704_v18 = vsel %vm381_vm15, %v685_v12, %v703_v15 }
 0x183   :  { %v630_v49 = vcvt.f32.s32 %v628_v37  ;;  %v629_v58 = vcvt.f32.s32 %v626_v52  ;;  %v619_v60 = vadd.s32 %v618_v50, %v616_v51  ;;  %v666_v4 = vsel %vm658_vm8, 1, %v820_v7 }
 0x184   :  { %v689_v16 = vrot.slane %v666_v4, %v854_v5 }
 0x185   :  { %v631_v57 = vshll.u32 %v630_v49, 16  ;;  %vm651_vm4 = vcmp.eq.s32.totalorder %v619_v60, 0 }
 0x186   :  { %v641_v47 = vpop.xlane.xlu0 %640  ;;  %vm659_vm5 = vmxor %vm651_vm4, %vm822_vm3  ;;  %v705_v21 = vsel %vm383_vm9, %v689_v16, %v704_v18 }
 0x187   :  { %v643_v56 = vcvt.f32.s32 %v641_v47  ;;  %v632_v3 = vadd.s32 %v631_v57, %v629_v58  ;;  %v667_v17 = vsel %vm659_vm5, 1, %v820_v7 }
 0x188   :  { %v693_v19 = vrot.slane %v667_v17, %v854_v5 }
 0x189   :  { %v644_v0 = vshll.u32 %v643_v56, 16  ;;  %vm652_vm10 = vcmp.eq.s32.totalorder %v632_v3, 0 }
 0x18a   :  { %v639_v59 = vpop.xlane.xlu0 %638  ;;  %vm660_vm14 = vmxor %vm652_vm10, %vm822_vm3  ;;  %v706_v25 = vsel %vm385_vm7, %v693_v19, %v705_v21  ;;  %vm736_vm7 = vcmask 0  }
 0x18b   :  { %v642_v1 = vcvt.f32.s32 %v639_v59  ;;  %v668_v10 = vsel %vm660_vm14, 1, %v820_v7 }
 0x18c   :  { %v697_v2 = vrot.slane %v668_v10, %v854_v5 }
 0x18d   :  { %v645_v11 = vadd.s32 %v644_v0, %v642_v1 }
 0x18e   :  { %v707_v31 = vsel %vm387_vm13, %v697_v2, %v706_v25 }
 0x18f   :  { %vm653_vm1 = vcmp.eq.s32.totalorder %v645_v11, 0 }
 0x190   :  { %vm661_vm11 = vmxor %vm653_vm1, %vm822_vm3 }
 0x191   :  { %v669_v23 = vsel %vm661_vm11, 1, %v820_v7 }
 0x192   :  { %v701_v29 = vrot.slane %v669_v23, %v854_v5 }
 0x194   :  { %v708_v34 = vsel %vm389_vm12, %v701_v29, %v707_v31 }
 0x195   :  { %vm709_vm15 = vcmp.ne.s32.totalorder %v708_v34, 0 }
 0x1ca   :  { %v420_v13 = vpop.xlane.xlu1 %419 }
 0x1cb   :  { %v422_v22 = vcvt.f32.s32 %v420_v13 }
 0x1cd   :  { %v423_v27 = vshll.u32 %v422_v22, 16 }
 0x1ce   :  { %v418_v20 = vpop.xlane.xlu1 %417 }
 0x1cf   :  { %v421_v24 = vcvt.f32.s32 %v418_v20 }
 0x1d1   :  { %v424_v30 = vadd.s32 %v423_v27, %v421_v24 }
 0x1d3   :  { %v428_v35 = vrot.slane %v424_v30, %v854_v5 }
 0x1d4   :  { %v407_v26 = vpop.xlane.xlu0 %406 }
 0x1d5   :  { %v409_v28 = vcvt.f32.s32 %v407_v26 }
 0x1d7   :  { %v410_v33 = vshll.u32 %v409_v28, 16 }
 0x1d8   :  { %v405_v32 = vpop.xlane.xlu0 %404 }
 0x1d9   :  { %v408_v14 = vcvt.f32.s32 %v405_v32 }
 0x1db   :  { %v411_v36 = vadd.s32 %v410_v33, %v408_v14 }
 0x1dd   :  { %vm435_vm6 = vcmp.eq.s32.totalorder %v411_v36, %v428_v35 }
 0x1de   :  { %vm710_vm9 = vmand %vm435_vm6, %vm709_vm15 }
 0x1df   :  { %v711_v37 = vsel %vm710_vm9, 1, %v820_v7 }
 0x1e0   :  { %v712_v38 = vsel %vm398_vm2, %v711_v37, 0 }
 0x1e1   :  { %v714_v39 = vshrl.u32 %v712_v38, 16  ;;  %v713_v40 = vand.u32 65535, %v712_v38 }
 0x1e3   :  { %v716_v41 = vcvt.s32.f32 %v714_v39  ;;  %v715_v42 = vcvt.s32.f32 %v713_v40 }
 0x1e5   :  { %719 = vadd.xlane.f32.xlu1 %v716_v41  ;;  %717 = vadd.xlane.f32.xlu0 %v715_v42 }
 0x272   :  { %v720_v43 = vpop.xlane.xlu1 %719  ;;  %v718_v44 = vpop.xlane.xlu0 %717 }
 0x273   :  { %v722_v45 = vcvt.f32.s32 %v720_v43  ;;  %v721_v47 = vcvt.f32.s32 %v718_v44 }
 0x275   :  { %v723_v46 = vshll.u32 %v722_v45, 16 }
 0x277   :  { %v724_v5 = vadd.s32 %v723_v46, %v721_v47 }
 0x279   :  { %v725_v48 = vrot.slane %v724_v5, 4 }
 0x27b   :  { %v726_v49 = vadd.s32 %v725_v48, %v724_v5 }
 0x27d   :  { %v727_v50 = vrot.slane %v726_v49, 2 }
 0x27f   :  { %v728_v51 = vadd.s32 %v727_v50, %v726_v49 }
 0x281   :  { %v729_v52 = vrot.slane %v728_v51, 1 }
 0x283   :  { %v730_v7 = vadd.s32 %v729_v52, %v728_v51 }
 0x285   :  { %754 = vpush %v730_v7 }
 0x2b6   :  { %s755_s21 = spop %754 }
 0x2b7   :  { %v732_v53 = vstv %s755_s21 }
 0x2b8   :  { %vm733_vm13 = vcmp.eq.s32.totalorder %v732_v53, 0 }
 0x2b9   :  { %v753_v55 = vsel %vm733_vm13, 1.0, %v824_v54 }
 0x2ba   :  { %737 = vst.msk [vmem:[#allocation5] sm:$0x1] %vm736_vm7, %v753_v55 }
 0x2bb   :  { %801 = shalt.err (!%p798_p12)
}
 0x2bc   :  { %s802_s26 = scalar_lea.hbm %s1140_s1, 16 }
 0x2bd   :  { %p803_p13 = scmp.ne.s32.totalorder %s1140_s1, %s802_s26  ;;  %p806_p0 = scmp.lt.u32.totalorder %s802_s26, %s1140_s1 }
 0x2bf   :  { %p808_p1 = pnand %p806_p0, %p803_p13 }
 0x2c1   :  { %811 = shalt.err (!%p808_p1)
}
 0x2c2   :  { %747 = dma.vmem_to_hbm [thread:$0]  %s745_s20, 16, %s1140_s1, [#allocation4]  }
 0x2c3   :  { %814 = dma.done.wait [#allocation4], 16  }
 0x2c4   :  { %815 = vsyncadd [#allocation4], 4294967280 }
 0x2c5   :  { %751 = vsyncpa [#allocation3], 1 }
 0x2c6   :  { %752 = vsyncpa [#allocation4], 1 }

</bundles_post_ra>
